<compile_context>
chip_gen: v5e
topology: v5e:2x2
jax: 0.10.0
libtpu: 0.0.40
codegen_flags: <defaults>
</compile_context>

<pallas_src>
import functools

import jax
import jax.numpy as jnp
from jax.experimental import pallas as pl
from jax.experimental.pallas import tpu as pltpu


def _round_up(v, m):
    return ((v + m - 1) // m) * m


def _phase_plan(kt, stride, padding):
    """Polyphase plan for ConvTranspose1d.

    Output position l = q*stride + r receives x[q - d] @ W[:, :, k] for every
    (k, d) in plan[r] (out-of-range x rows contribute zero).
    """
    plan = []
    for r in range(stride):
        taps = []
        for k in range(kt):
            if (k - r - padding) % stride == 0:
                taps.append((k, (k - r - padding) // stride))
        plan.append(taps)
    return plan


@functools.lru_cache(maxsize=None)
def _build_up_conv_call(B, L, Cin_p, Cout_p, kt, stride, padding):
    assert stride >= 1 and kt >= stride, "TODO(synk): kernel_size < stride unsupported"
    assert 0 <= padding <= kt - 1
    n_ph = stride
    Lup = (L - 1) * stride - 2 * padding + kt
    assert Lup >= 1
    Lph = _round_up(-(-Lup // stride), 8)             # per-phase rows, sublane dense

    phases = _phase_plan(kt, stride, padding)
    max_d = max(d for taps in phases for _, d in taps)
    min_d = min(d for taps in phases for _, d in taps)
    d_range = tuple(range(min_d, max_d + 1))
    n_d = len(d_range)

    pad_l = max(0, max_d)
    pad_r = max(0, (Lph - 1) - min_d - (L - 1))
    Lxp = _round_up(L + pad_l + pad_r, 8)             # padded input slab length
    pad_r = Lxp - L - pad_l

    # Batch tiling: fold batches into the matmul M dimension until M >= 128.
    Bblk = min(B, max(1, -(-128 // Lph)))
    n_tiles = -(-B // Bblk)
    B_pad = n_tiles * Bblk

    NP = n_ph * Cout_p
    M = Bblk * Lph
    need_mask = any((Lph - 1) * stride + r >= Lup for r in range(n_ph))

    # Conv1d(k=3, p=1) in phase space: output phase r, tap j reads absolute offset
    # m = r-1+j -> source phase rp = m % stride at row shift e = (m - rp)//stride.
    conv_plan = []
    for r in range(n_ph):
        src = []
        for j in range(3):
            m = r - 1 + j
            rp = m % n_ph
            src.append((rp, (m - rp) // n_ph))
        conv_plan.append(src)

    def kernel(x_ref, wd_ref, bd_ref, wc_ref, bc_ref, o_ref):
        # -- stage 1: polyphase ConvTranspose1d, single N-packed im2col matmul ----
        rows = []
        for b in range(Bblk):
            xb = x_ref[b]                                        # (Lxp, Cin_p) bf16
            cols = [xb[pad_l - d:pad_l - d + Lph, :] for d in d_range]
            rows.append(cols[0] if n_d == 1 else jnp.concatenate(cols, axis=-1))
        a1 = rows[0] if Bblk == 1 else jnp.concatenate(rows, axis=0)   # (M, n_d*Cin_p)
        h = jnp.dot(a1, wd_ref[...], preferred_element_type=jnp.float32) + bd_ref[...]
        if need_mask:  # trace-time decision; rows past the true length must be zero
            q = jax.lax.broadcasted_iota(jnp.int32, (M, NP), 0) % Lph
            r_lane = jax.lax.broadcasted_iota(jnp.int32, (M, NP), 1) // Cout_p
            h = jnp.where(q * stride + r_lane < Lup, h, 0.0)
        hb = h.astype(jnp.bfloat16)            # reference bf16-rounds h between stages

        # -- stage 2: Conv1d(k=3,p=1) + folded BatchNorm + LeakyReLU epilogue -----
        zrow = jnp.zeros((1, Cout_p), jnp.bfloat16)
        ys = []
        for r in range(n_ph):
            ops = []
            for b in range(Bblk):
                hbb = hb[b * Lph:(b + 1) * Lph, :]
                segs = []
                for rp, e in conv_plan[r]:
                    s = hbb[:, rp * Cout_p:(rp + 1) * Cout_p]
                    if e == -1:                                  # read row q-1 (zero pad)
                        s = jnp.concatenate([zrow, s[:Lph - 1, :]], axis=0)
                    elif e == 1:                                 # read row q+1 (zero pad)
                        s = jnp.concatenate([s[1:, :], zrow], axis=0)
                    segs.append(s)
                ops.append(jnp.concatenate(segs, axis=-1))
            a2 = ops[0] if Bblk == 1 else jnp.concatenate(ops, axis=0)  # (M, 3*Cout_p)
            y = jnp.dot(a2, wc_ref[...], preferred_element_type=jnp.float32) + bc_ref[...]
            ys.append(jnp.where(y > 0.0, y, 0.01 * y).astype(jnp.bfloat16))

        out = ys[0] if n_ph == 1 else jnp.concatenate(ys, axis=-1)      # (M, NP)
        for b in range(Bblk):
            o_ref[b] = out[b * Lph:(b + 1) * Lph, :]

    in_specs = [
        pl.BlockSpec((Bblk, Lxp, Cin_p), lambda t: (t, 0, 0)),          # activations
        pl.BlockSpec((n_d * Cin_p, NP), lambda t: (0, 0)),              # packed deconv W
        pl.BlockSpec((1, NP), lambda t: (0, 0)),                        # deconv bias
        pl.BlockSpec((3 * Cout_p, Cout_p), lambda t: (0, 0)),           # conv W (BN folded)
        pl.BlockSpec((1, Cout_p), lambda t: (0, 0)),                    # conv bias
    ]
    out_spec = pl.BlockSpec((Bblk, Lph, NP), lambda t: (t, 0, 0))

    blk_bytes = (Bblk * Lxp * Cin_p * 2 + n_d * Cin_p * NP * 2
                 + 3 * Cout_p * Cout_p * 2 + (NP + Cout_p) * 4
                 + Bblk * Lph * NP * 2)
    tmp_bytes = M * (n_d * Cin_p * 2 + NP * 8 + 3 * Cout_p * 2 + Cout_p * 4)
    try:
        cap = int(pltpu.get_tpu_info().vmem_capacity_bytes)
    except Exception:
        cap = 64 << 20                                   # conservative (v7x) fallback
    budget = min(100 << 20, (cap * 3) // 4)
    vmem_limit = int(min(budget, max(32 << 20, 2 * blk_bytes + tmp_bytes + (8 << 20))))

    call = pl.pallas_call(
        kernel,
        out_shape=jax.ShapeDtypeStruct((B_pad, Lph, NP), jnp.bfloat16),
        grid=(n_tiles,),
        in_specs=in_specs,
        out_specs=out_spec,
        compiler_params=pltpu.CompilerParams(
            dimension_semantics=("parallel",),
            vmem_limit_bytes=vmem_limit),
    )
    meta = (Lup, Lph, pad_l, pad_r, n_ph, B_pad, d_range)
    return call, meta


def up_conv_fwd(params, x_ncl, *, kernel_size, stride, padding):
    """PyTorch up_conv.forward (eval-mode). x_ncl: (B, in_ch, L) NCL -> (B, out_ch, L_up)."""
    eps = 1e-5
    B, Cin, L = x_ncl.shape
    Wt, bt = params['deconv_w'], params['deconv_b']          # (Cin, Cout, Kt), (Cout,)
    Wc, bc = params['conv_w'], params['conv_b']              # (Cout, Cout, 3), (Cout,)
    Cout = Wt.shape[1]
    Cin_p, Cout_p = _round_up(Cin, 128), _round_up(Cout, 128)

    call, (Lup, Lph, pad_l, pad_r, n_ph, B_pad, d_range) = _build_up_conv_call(
        B, L, Cin_p, Cout_p, kernel_size, stride, padding)

    # fold eval-mode BatchNorm1d into the second conv (free at prep time)
    s_bn = params['bn_gamma'] * jax.lax.rsqrt(params['bn_var'] + eps)
    Wc_f = Wc * s_bn[:, None, None]
    bc_f = bc * s_bn + (params['bn_beta'] - params['bn_mean'] * s_bn)

    def pad2(w, rows, cols):
        return jnp.pad(w, ((0, rows - w.shape[0]), (0, cols - w.shape[1])))

    # stage-1 packed weight: K = union of row-offsets d, N = phases packed along lanes
    blocks = []
    for d in d_range:
        cols_r = []
        for r in range(n_ph):
            k = d * stride + r + padding
            if 0 <= k < kernel_size:
                cols_r.append(pad2(Wt[:, :, k], Cin_p, Cout_p))
            else:
                cols_r.append(jnp.zeros((Cin_p, Cout_p), Wt.dtype))
            del k
        blocks.append(cols_r[0] if n_ph == 1 else jnp.concatenate(cols_r, axis=1))
    wd = (blocks[0] if len(blocks) == 1
          else jnp.concatenate(blocks, axis=0)).astype(jnp.bfloat16)
    bt_p = jnp.pad(bt, (0, Cout_p - Cout)).reshape(1, Cout_p)
    bd = jnp.tile(bt_p, (1, n_ph)).astype(jnp.float32)

    # stage-2 weight (im2col order over the 3 taps), bias
    wc = jnp.concatenate([pad2(Wc_f[:, :, j].T, Cout_p, Cout_p) for j in range(3)],
                         axis=0).astype(jnp.bfloat16)
    bcp = jnp.pad(bc_f, (0, Cout_p - Cout)).reshape(1, Cout_p).astype(jnp.float32)

    # activations: channels-last, pad batch / halo / channels, bf16 for the MXU
    x = jnp.transpose(x_ncl, (0, 2, 1))
    x = jnp.pad(x, ((0, B_pad - B), (pad_l, pad_r), (0, Cin_p - Cin))).astype(jnp.bfloat16)

    out = call(x, wd, bd, wc, bcp)                           # (B_pad, Lph, n_ph*Cout_p) bf16
    out = out.reshape(B_pad, Lph * n_ph, Cout_p)             # free view: time-interleaved
    out = out[:B, :Lup, :Cout].astype(jnp.float32)
    return jnp.transpose(out, (0, 2, 1))                     # NCL


# ---------------------------------------------------------------------------
# Pure-JAX reference (bf16-rounded operands to mirror the kernel's MXU path)
# ---------------------------------------------------------------------------

def _bf16_round(v):
    return v.astype(jnp.bfloat16).astype(jnp.float32)


def up_conv_ref(params, x_ncl, *, kernel_size, stride, padding):
    eps = 1e-5
    B, Cin, L = x_ncl.shape
    kt = kernel_size
    Wt = _bf16_round(params['deconv_w'])
    bt = params['deconv_b']
    Cout = Wt.shape[1]
    s_bn = params['bn_gamma'] * jax.lax.rsqrt(params['bn_var'] + eps)
    Wc_f = _bf16_round(params['conv_w'] * s_bn[:, None, None])
    bc_f = params['conv_b'] * s_bn + (params['bn_beta'] - params['bn_mean'] * s_bn)

    Lup = (L - 1) * stride - 2 * padding + kt
    x = _bf16_round(jnp.transpose(x_ncl, (0, 2, 1)))
    # ConvTranspose1d == zero-insertion + pad (Kt-1-p) + correlation with K-flipped weight
    up = jnp.zeros((B, (L - 1) * stride + 1, Cin), jnp.float32).at[:, ::stride, :].set(x)
    up = jnp.pad(up, ((0, 0), (kt - 1 - padding,) * 2, (0, 0)))
    h = jnp.zeros((B, Lup, Cout), jnp.float32) + bt
    for k in range(kt):
        h = h + up[:, k:k + Lup, :] @ Wt[:, :, kt - 1 - k]
    h = _bf16_round(h)
    hp = jnp.pad(h, ((0, 0), (1, 1), (0, 0)))
    y = jnp.zeros((B, Lup, Cout), jnp.float32) + bc_f
    for j in range(3):
        y = y + hp[:, j:j + Lup, :] @ jnp.swapaxes(Wc_f[:, :, j], 0, 1)
    y = jnp.where(y > 0.0, y, 0.01 * y)                      # LeakyReLU(0.01)
    return jnp.transpose(y, (0, 2, 1))


# ---------------------------------------------------------------------------
# Main
# ---------------------------------------------------------------------------

if __name__ == "__main__":
    key = jax.random.PRNGKey(0)
    B, in_ch, out_ch, L = 2, 64, 32, 16
    kernel_size, stride, padding = 4, 2, 1                   # up_conv(64, 32, 4, 2, 1)

    ks = jax.random.split(key, 8)
    params = {
        'deconv_w': 0.1 * jax.random.normal(ks[0], (in_ch, out_ch, kernel_size), jnp.float32),
        'deconv_b': 0.1 * jax.random.normal(ks[1], (out_ch,), jnp.float32),
        'conv_w':   0.1 * jax.random.normal(ks[2], (out_ch, out_ch, 3), jnp.float32),
        'conv_b':   0.1 * jax.random.normal(ks[3], (out_ch,), jnp.float32),
        'bn_gamma': 1.0 + 0.1 * jax.random.normal(ks[4], (out_ch,), jnp.float32),
        'bn_beta':  0.1 * jax.random.normal(ks[5], (out_ch,), jnp.float32),
        'bn_mean':  0.1 * jax.random.normal(ks[6], (out_ch,), jnp.float32),
        'bn_var':   jnp.abs(1.0 + 0.1 * jax.random.normal(ks[7], (out_ch,), jnp.float32)),
    }
    x = jax.random.normal(jax.random.fold_in(key, 99), (B, in_ch, L), jnp.float32)  # NCL

    fwd = jax.jit(up_conv_fwd, static_argnames=("kernel_size", "stride", "padding"))
    out = fwd(params, x, kernel_size=kernel_size, stride=stride, padding=padding)
    out = jax.block_until_ready(out)

    Lup = (L - 1) * stride - 2 * padding + kernel_size
    assert out.shape == (B, out_ch, Lup), out.shape
    assert bool(jnp.all(jnp.isfinite(out)))

    ref = up_conv_ref(params, x, kernel_size=kernel_size, stride=stride, padding=padding)
    assert bool(jnp.allclose(out, ref, rtol=2e-2, atol=2e-2)), \
        float(jnp.max(jnp.abs(out - ref)))

    print("KERNEL_OK")
</pallas_src>

<mosaic_0001>
module attributes {stable_mosaic.version = 11 : i64} {
  func.func @kernel(%arg0: i32, %arg1: memref<2x24x128xbf16, #tpu.memory_space<vmem>>, %arg2: memref<384x256xbf16, #tpu.memory_space<vmem>>, %arg3: memref<1x256xf32, #tpu.memory_space<vmem>>, %arg4: memref<384x128xbf16, #tpu.memory_space<vmem>>, %arg5: memref<1x128xf32, #tpu.memory_space<vmem>>, %arg6: memref<2x16x256xbf16, #tpu.memory_space<vmem>>) attributes {dimension_semantics = [#tpu.dimension_semantics<parallel>], iteration_bounds = array<i64: 1>, scalar_prefetch = 0 : i64, scratch_operands = 0 : i64, tpu.core_type = #tpu.core_type<tc>, window_params = [{transform_indices = @transform_0, window_bounds = array<i64: 2, 24, 128>}, {pipeline_mode = #tpu.pipeline_mode<synchronous>, transform_indices = @transform_1, window_bounds = array<i64: 384, 256>}, {pipeline_mode = #tpu.pipeline_mode<synchronous>, transform_indices = @transform_2, window_bounds = array<i64: 1, 256>}, {pipeline_mode = #tpu.pipeline_mode<synchronous>, transform_indices = @transform_3, window_bounds = array<i64: 384, 128>}, {pipeline_mode = #tpu.pipeline_mode<synchronous>, transform_indices = @transform_4, window_bounds = array<i64: 1, 128>}, {transform_indices = @transform_5, window_bounds = array<i64: 2, 16, 256>}]} {
    %c0 = arith.constant 0 : index
    %c0_0 = arith.constant 0 : index
    %c0_1 = arith.constant 0 : index
    %0 = vector.load %arg1[%c0, %c0_0, %c0_1] : memref<2x24x128xbf16, #tpu.memory_space<vmem>>, vector<1x24x128xbf16>
    %1 = vector.shape_cast %0 : vector<1x24x128xbf16> to vector<24x128xbf16>
    %2 = vector.extract_strided_slice %1 {offsets = [2, 0], sizes = [16, 128], strides = [1, 1]} : vector<24x128xbf16> to vector<16x128xbf16>
    %3 = vector.extract_strided_slice %1 {offsets = [1, 0], sizes = [16, 128], strides = [1, 1]} : vector<24x128xbf16> to vector<16x128xbf16>
    %4 = vector.extract_strided_slice %1 {offsets = [0, 0], sizes = [16, 128], strides = [1, 1]} : vector<24x128xbf16> to vector<16x128xbf16>
    %5 = tpu.concatenate %2, %3, %4 in 1 : vector<16x128xbf16>, vector<16x128xbf16>, vector<16x128xbf16> -> vector<16x384xbf16>
    %c1 = arith.constant 1 : index
    %c0_2 = arith.constant 0 : index
    %c0_3 = arith.constant 0 : index
    %6 = vector.load %arg1[%c1, %c0_2, %c0_3] : memref<2x24x128xbf16, #tpu.memory_space<vmem>>, vector<1x24x128xbf16>
    %7 = vector.shape_cast %6 : vector<1x24x128xbf16> to vector<24x128xbf16>
    %8 = vector.extract_strided_slice %7 {offsets = [2, 0], sizes = [16, 128], strides = [1, 1]} : vector<24x128xbf16> to vector<16x128xbf16>
    %9 = vector.extract_strided_slice %7 {offsets = [1, 0], sizes = [16, 128], strides = [1, 1]} : vector<24x128xbf16> to vector<16x128xbf16>
    %10 = vector.extract_strided_slice %7 {offsets = [0, 0], sizes = [16, 128], strides = [1, 1]} : vector<24x128xbf16> to vector<16x128xbf16>
    %11 = tpu.concatenate %8, %9, %10 in 1 : vector<16x128xbf16>, vector<16x128xbf16>, vector<16x128xbf16> -> vector<16x384xbf16>
    %12 = tpu.concatenate %5, %11 in 0 : vector<16x384xbf16>, vector<16x384xbf16> -> vector<32x384xbf16>
    %c0_4 = arith.constant 0 : index
    %c0_5 = arith.constant 0 : index
    %13 = vector.load %arg2[%c0_4, %c0_5] : memref<384x256xbf16, #tpu.memory_space<vmem>>, vector<384x256xbf16>
    %cst = arith.constant dense<0.000000e+00> : vector<32x256xf32>
    %14 = tpu.matmul %12, %13, %cst {dimension_numbers = #tpu.dot_dimension_numbers<[1], [0], [0], [1], [0, 0, 1, 1], [], []>} : vector<32x384xbf16>, vector<384x256xbf16>, vector<32x256xf32> -> vector<32x256xf32>
    %c0_6 = arith.constant 0 : index
    %c0_7 = arith.constant 0 : index
    %15 = vector.load %arg3[%c0_6, %c0_7] : memref<1x256xf32, #tpu.memory_space<vmem>>, vector<1x256xf32>
    %16 = vector.broadcast %15 : vector<1x256xf32> to vector<32x256xf32>
    %17 = arith.addf %14, %16 : vector<32x256xf32>
    %18 = arith.truncf %17 : vector<32x256xf32> to vector<32x256xbf16>
    %cst_8 = arith.constant 0.000000e+00 : bf16
    %19 = vector.broadcast %cst_8 : bf16 to vector<1x128xbf16>
    %20 = vector.extract_strided_slice %18 {offsets = [0, 0], sizes = [16, 256], strides = [1, 1]} : vector<32x256xbf16> to vector<16x256xbf16>
    %21 = vector.extract_strided_slice %20 {offsets = [0, 128], sizes = [16, 128], strides = [1, 1]} : vector<16x256xbf16> to vector<16x128xbf16>
    %22 = vector.extract_strided_slice %21 {offsets = [0, 0], sizes = [15, 128], strides = [1, 1]} : vector<16x128xbf16> to vector<15x128xbf16>
    %23 = tpu.concatenate %19, %22 in 0 : vector<1x128xbf16>, vector<15x128xbf16> -> vector<16x128xbf16>
    %24 = vector.extract_strided_slice %20 {offsets = [0, 0], sizes = [16, 128], strides = [1, 1]} : vector<16x256xbf16> to vector<16x128xbf16>
    %25 = vector.extract_strided_slice %20 {offsets = [0, 128], sizes = [16, 128], strides = [1, 1]} : vector<16x256xbf16> to vector<16x128xbf16>
    %26 = tpu.concatenate %23, %24, %25 in 1 : vector<16x128xbf16>, vector<16x128xbf16>, vector<16x128xbf16> -> vector<16x384xbf16>
    %27 = vector.extract_strided_slice %18 {offsets = [16, 0], sizes = [16, 256], strides = [1, 1]} : vector<32x256xbf16> to vector<16x256xbf16>
    %28 = vector.extract_strided_slice %27 {offsets = [0, 128], sizes = [16, 128], strides = [1, 1]} : vector<16x256xbf16> to vector<16x128xbf16>
    %29 = vector.extract_strided_slice %28 {offsets = [0, 0], sizes = [15, 128], strides = [1, 1]} : vector<16x128xbf16> to vector<15x128xbf16>
    %30 = tpu.concatenate %19, %29 in 0 : vector<1x128xbf16>, vector<15x128xbf16> -> vector<16x128xbf16>
    %31 = vector.extract_strided_slice %27 {offsets = [0, 0], sizes = [16, 128], strides = [1, 1]} : vector<16x256xbf16> to vector<16x128xbf16>
    %32 = vector.extract_strided_slice %27 {offsets = [0, 128], sizes = [16, 128], strides = [1, 1]} : vector<16x256xbf16> to vector<16x128xbf16>
    %33 = tpu.concatenate %30, %31, %32 in 1 : vector<16x128xbf16>, vector<16x128xbf16>, vector<16x128xbf16> -> vector<16x384xbf16>
    %34 = tpu.concatenate %26, %33 in 0 : vector<16x384xbf16>, vector<16x384xbf16> -> vector<32x384xbf16>
    %c0_9 = arith.constant 0 : index
    %c0_10 = arith.constant 0 : index
    %35 = vector.load %arg4[%c0_9, %c0_10] : memref<384x128xbf16, #tpu.memory_space<vmem>>, vector<384x128xbf16>
    %cst_11 = arith.constant dense<0.000000e+00> : vector<32x128xf32>
    %36 = tpu.matmul %34, %35, %cst_11 {dimension_numbers = #tpu.dot_dimension_numbers<[1], [0], [0], [1], [0, 0, 1, 1], [], []>} : vector<32x384xbf16>, vector<384x128xbf16>, vector<32x128xf32> -> vector<32x128xf32>
    %c0_12 = arith.constant 0 : index
    %c0_13 = arith.constant 0 : index
    %37 = vector.load %arg5[%c0_12, %c0_13] : memref<1x128xf32, #tpu.memory_space<vmem>>, vector<1x128xf32>
    %38 = vector.broadcast %37 : vector<1x128xf32> to vector<32x128xf32>
    %39 = arith.addf %36, %38 : vector<32x128xf32>
    %cst_14 = arith.constant 0.000000e+00 : f32
    %40 = vector.broadcast %cst_14 : f32 to vector<32x128xf32>
    %41 = arith.cmpf ogt, %39, %40 : vector<32x128xf32>
    %cst_15 = arith.constant 0.00999999977 : f32
    %42 = vector.broadcast %cst_15 : f32 to vector<32x128xf32>
    %43 = arith.mulf %42, %39 : vector<32x128xf32>
    %44 = arith.select %41, %39, %43 : vector<32x128xi1>, vector<32x128xf32>
    %45 = arith.truncf %44 : vector<32x128xf32> to vector<32x128xbf16>
    %46 = vector.extract_strided_slice %18 {offsets = [0, 0], sizes = [16, 256], strides = [1, 1]} : vector<32x256xbf16> to vector<16x256xbf16>
    %47 = vector.extract_strided_slice %46 {offsets = [0, 0], sizes = [16, 128], strides = [1, 1]} : vector<16x256xbf16> to vector<16x128xbf16>
    %48 = vector.extract_strided_slice %46 {offsets = [0, 128], sizes = [16, 128], strides = [1, 1]} : vector<16x256xbf16> to vector<16x128xbf16>
    %49 = vector.extract_strided_slice %46 {offsets = [0, 0], sizes = [16, 128], strides = [1, 1]} : vector<16x256xbf16> to vector<16x128xbf16>
    %50 = vector.extract_strided_slice %49 {offsets = [1, 0], sizes = [15, 128], strides = [1, 1]} : vector<16x128xbf16> to vector<15x128xbf16>
    %51 = tpu.concatenate %50, %19 in 0 : vector<15x128xbf16>, vector<1x128xbf16> -> vector<16x128xbf16>
    %52 = tpu.concatenate %47, %48, %51 in 1 : vector<16x128xbf16>, vector<16x128xbf16>, vector<16x128xbf16> -> vector<16x384xbf16>
    %53 = vector.extract_strided_slice %18 {offsets = [16, 0], sizes = [16, 256], strides = [1, 1]} : vector<32x256xbf16> to vector<16x256xbf16>
    %54 = vector.extract_strided_slice %53 {offsets = [0, 0], sizes = [16, 128], strides = [1, 1]} : vector<16x256xbf16> to vector<16x128xbf16>
    %55 = vector.extract_strided_slice %53 {offsets = [0, 128], sizes = [16, 128], strides = [1, 1]} : vector<16x256xbf16> to vector<16x128xbf16>
    %56 = vector.extract_strided_slice %53 {offsets = [0, 0], sizes = [16, 128], strides = [1, 1]} : vector<16x256xbf16> to vector<16x128xbf16>
    %57 = vector.extract_strided_slice %56 {offsets = [1, 0], sizes = [15, 128], strides = [1, 1]} : vector<16x128xbf16> to vector<15x128xbf16>
    %58 = tpu.concatenate %57, %19 in 0 : vector<15x128xbf16>, vector<1x128xbf16> -> vector<16x128xbf16>
    %59 = tpu.concatenate %54, %55, %58 in 1 : vector<16x128xbf16>, vector<16x128xbf16>, vector<16x128xbf16> -> vector<16x384xbf16>
    %60 = tpu.concatenate %52, %59 in 0 : vector<16x384xbf16>, vector<16x384xbf16> -> vector<32x384xbf16>
    %c0_16 = arith.constant 0 : index
    %c0_17 = arith.constant 0 : index
    %61 = vector.load %arg4[%c0_16, %c0_17] : memref<384x128xbf16, #tpu.memory_space<vmem>>, vector<384x128xbf16>
    %cst_18 = arith.constant dense<0.000000e+00> : vector<32x128xf32>
    %62 = tpu.matmul %60, %61, %cst_18 {dimension_numbers = #tpu.dot_dimension_numbers<[1], [0], [0], [1], [0, 0, 1, 1], [], []>} : vector<32x384xbf16>, vector<384x128xbf16>, vector<32x128xf32> -> vector<32x128xf32>
    %c0_19 = arith.constant 0 : index
    %c0_20 = arith.constant 0 : index
    %63 = vector.load %arg5[%c0_19, %c0_20] : memref<1x128xf32, #tpu.memory_space<vmem>>, vector<1x128xf32>
    %64 = vector.broadcast %63 : vector<1x128xf32> to vector<32x128xf32>
    %65 = arith.addf %62, %64 : vector<32x128xf32>
    %cst_21 = arith.constant 0.000000e+00 : f32
    %66 = vector.broadcast %cst_21 : f32 to vector<32x128xf32>
    %67 = arith.cmpf ogt, %65, %66 : vector<32x128xf32>
    %cst_22 = arith.constant 0.00999999977 : f32
    %68 = vector.broadcast %cst_22 : f32 to vector<32x128xf32>
    %69 = arith.mulf %68, %65 : vector<32x128xf32>
    %70 = arith.select %67, %65, %69 : vector<32x128xi1>, vector<32x128xf32>
    %71 = arith.truncf %70 : vector<32x128xf32> to vector<32x128xbf16>
    %72 = tpu.concatenate %45, %71 in 1 : vector<32x128xbf16>, vector<32x128xbf16> -> vector<32x256xbf16>
    %73 = vector.extract_strided_slice %72 {offsets = [0, 0], sizes = [16, 256], strides = [1, 1]} : vector<32x256xbf16> to vector<16x256xbf16>
    %c0_23 = arith.constant 0 : index
    %c0_24 = arith.constant 0 : index
    %c0_25 = arith.constant 0 : index
    %74 = vector.load %arg6[%c0_23, %c0_24, %c0_25] : memref<2x16x256xbf16, #tpu.memory_space<vmem>>, vector<1x16x256xbf16>
    %75 = vector.shape_cast %74 : vector<1x16x256xbf16> to vector<16x256xbf16>
    %76 = vector.shape_cast %73 : vector<16x256xbf16> to vector<1x16x256xbf16>
    tpu.vector_store %arg6[%c0_23, %c0_24, %c0_25], %76 {strides = array<i32>} : memref<2x16x256xbf16, #tpu.memory_space<vmem>>, vector<1x16x256xbf16>,
    %77 = vector.extract_strided_slice %72 {offsets = [16, 0], sizes = [16, 256], strides = [1, 1]} : vector<32x256xbf16> to vector<16x256xbf16>
    %c1_26 = arith.constant 1 : index
    %c0_27 = arith.constant 0 : index
    %c0_28 = arith.constant 0 : index
    %78 = vector.load %arg6[%c1_26, %c0_27, %c0_28] : memref<2x16x256xbf16, #tpu.memory_space<vmem>>, vector<1x16x256xbf16>
    %79 = vector.shape_cast %78 : vector<1x16x256xbf16> to vector<16x256xbf16>
    %80 = vector.shape_cast %77 : vector<16x256xbf16> to vector<1x16x256xbf16>
    tpu.vector_store %arg6[%c1_26, %c0_27, %c0_28], %80 {strides = array<i32>} : memref<2x16x256xbf16, #tpu.memory_space<vmem>>, vector<1x16x256xbf16>,
    return
  }
  func.func @transform_0(%arg0: i32) -> (i32, i32, i32) {
    %c0_i32 = arith.constant 0 : i32
    %c0_i32_0 = arith.constant 0 : i32
    %c0_i32_1 = arith.constant 0 : i32
    return %arg0, %c0_i32, %c0_i32_0 : i32, i32, i32
  }
  func.func @transform_1(%arg0: i32) -> (i32, i32) {
    %c0_i32 = arith.constant 0 : i32
    %c0_i32_0 = arith.constant 0 : i32
    %c0_i32_1 = arith.constant 0 : i32
    return %c0_i32, %c0_i32_0 : i32, i32
  }
  func.func @transform_2(%arg0: i32) -> (i32, i32) {
    %c0_i32 = arith.constant 0 : i32
    %c0_i32_0 = arith.constant 0 : i32
    %c0_i32_1 = arith.constant 0 : i32
    return %c0_i32, %c0_i32_0 : i32, i32
  }
  func.func @transform_3(%arg0: i32) -> (i32, i32) {
    %c0_i32 = arith.constant 0 : i32
    %c0_i32_0 = arith.constant 0 : i32
    %c0_i32_1 = arith.constant 0 : i32
    return %c0_i32, %c0_i32_0 : i32, i32
  }
  func.func @transform_4(%arg0: i32) -> (i32, i32) {
    %c0_i32 = arith.constant 0 : i32
    %c0_i32_0 = arith.constant 0 : i32
    %c0_i32_1 = arith.constant 0 : i32
    return %c0_i32, %c0_i32_0 : i32, i32
  }
  func.func @transform_5(%arg0: i32) -> (i32, i32, i32) {
    %c0_i32 = arith.constant 0 : i32
    %c0_i32_0 = arith.constant 0 : i32
    %c0_i32_1 = arith.constant 0 : i32
    return %arg0, %c0_i32, %c0_i32_0 : i32, i32, i32
  }
}

</mosaic_0001>

<bundles_post_ra>
// kernel: up_conv_fwd.1
= control target key start
LH: loop header
LB: loop body
LE: loop exit
PB: predicated region body
PF: predicated region fallthrough
CT: control target
= control target key end

     0   :  { %vm32_vm0 = vsmask.f32 256  ;;  %vm69_vm1 = vcmask 1046528   ;;  %vm517_vm2 = vcmask 1040384   ;;  %vm821_vm4 = vcmask 1047552   ;;  %s1790_s1 = inlined_call_operand.vmem [shape: bf16[384,256], index: 1, kind: input, shape index: {}]   ;;  %s1791_s0 = inlined_call_operand.vmem [shape: bf16[2,24,128], index: 0, kind: input, shape index: {}]   ;;  %s1792_s3 = inlined_call_operand.vmem [shape: bf16[384,128], index: 3, kind: input, shape index: {}]   ;;  %s1793_s2 = inlined_call_operand.vmem [shape: f32[1,256], index: 2, kind: input, shape index: {}]   ;;  %s1794_s4 = inlined_call_operand.vmem [shape: f32[1,128], index: 4, kind: input, shape index: {}]   ;;  %s1795_s5 = inlined_call_operand.vmem [shape: bf16[2,16,256], index: 5, kind: output, shape index: {}]  }
   0x1   :  { %v1009_v0 = vld [vmem:[%s1790_s1 + $0x70] sm:$0xf]  ;;  %v1258_v1 = vld [vmem:[%s1790_s1 + $0x74] sm:$0xf0]  ;;  %v1001_v9 = vld [vmem:[%s1790_s1 + $0x60] sm:$0xf] }
   0x2   :  { %v1073_v2 = vld [vmem:[%s1790_s1 + $0xf0] sm:$0xf]  ;;  %v1010_v3 = vor.u32 %v1258_v1, %v1009_v0  ;;  %v1274_v4 = vld [vmem:[%s1790_s1 + $0xf4] sm:$0xf0]  ;;  %v1256_v10 = vld [vmem:[%s1790_s1 + $0x64] sm:$0xf0] }
   0x3   :  { %v1137_v5 = vld [vmem:[%s1790_s1 + $0x170] sm:$0xf]  ;;  %v1290_v6 = vld [vmem:[%s1790_s1 + $0x174] sm:$0xf0]  ;;  %v1074_v7 = vor.u32 %v1274_v4, %v1073_v2  ;;  %v1065_v11 = vld [vmem:[%s1790_s1 + $0xe0] sm:$0xf]  ;;  %v1002_v12 = vor.u32 %v1256_v10, %v1001_v9 }
   0x4   :  { %v1138_v8 = vor.u32 %v1290_v6, %v1137_v5  ;;  %386 = vmatpush.bf16.msra.mxu0 %v1010_v3  ;;  %v1272_v13 = vld [vmem:[%s1790_s1 + $0xe4] sm:$0xf0]  ;;  %v1129_v14 = vld [vmem:[%s1790_s1 + $0x160] sm:$0xf]  ;;  %v993_v18 = vld [vmem:[%s1790_s1 + $0x50] sm:$0xf] }
   0x5   :  { %v1288_v15 = vld [vmem:[%s1790_s1 + $0x164] sm:$0xf0]  ;;  %405 = vmatpush.bf16.msra.mxu1 %v1074_v7  ;;  %v1066_v16 = vor.u32 %v1272_v13, %v1065_v11  ;;  %v1254_v19 = vld [vmem:[%s1790_s1 + $0x54] sm:$0xf0]  ;;  %v1057_v20 = vld [vmem:[%s1790_s1 + $0xd0] sm:$0xf] }
   0x6   :  { %424 = vmatpush.bf16.msra.mxu2 %v1138_v8  ;;  %v1130_v17 = vor.u32 %v1288_v15, %v1129_v14  ;;  %v1270_v21 = vld [vmem:[%s1790_s1 + $0xd4] sm:$0xf0]  ;;  %v1121_v22 = vld [vmem:[%s1790_s1 + $0x150] sm:$0xf]  ;;  %v994_v24 = vor.u32 %v1254_v19, %v993_v18  ;;  %v985_v27 = vld [vmem:[%s1790_s1 + $0x40] sm:$0xf] }
   0x7   :  { %v1286_v23 = vld [vmem:[%s1790_s1 + $0x154] sm:$0xf0]  ;;  %v1058_v25 = vor.u32 %v1270_v21, %v1057_v20  ;;  %v1252_v28 = vld [vmem:[%s1790_s1 + $0x44] sm:$0xf0]  ;;  %v1049_v29 = vld [vmem:[%s1790_s1 + $0xc0] sm:$0xf] }
   0x8   :  { %387 = vmatpush.bf16.msra.mxu0 %v1002_v12  ;;  %v1122_v26 = vor.u32 %v1286_v23, %v1121_v22  ;;  %v1268_v30 = vld [vmem:[%s1790_s1 + $0xc4] sm:$0xf0]  ;;  %v1113_v31 = vld [vmem:[%s1790_s1 + $0x140] sm:$0xf]  ;;  %v1257_v33 = vld [vmem:[%s1790_s1 + $0x74] sm:$0xf]  ;;  %v986_v35 = vor.u32 %v1252_v28, %v985_v27 }
   0x9   :  { %406 = vmatpush.bf16.msra.mxu1 %v1066_v16  ;;  %v1284_v32 = vld [vmem:[%s1790_s1 + $0x144] sm:$0xf0]  ;;  %v1011_v34 = vld [vmem:[%s1790_s1 + $0x78] sm:$0xf0]  ;;  %v977_v36 = vld [vmem:[%s1790_s1 + $0x30] sm:$0xf]  ;;  %v1050_v39 = vor.u32 %v1268_v30, %v1049_v29 }
   0xa   :  { %425 = vmatpush.bf16.msra.mxu2 %v1130_v17  ;;  %v1250_v37 = vld [vmem:[%s1790_s1 + $0x34] sm:$0xf0]  ;;  %v1014_v38 = vor.u32 %v1257_v33, %v1011_v34  ;;  %v1114_v40 = vor.u32 %v1284_v32, %v1113_v31  ;;  %v1041_v41 = vld [vmem:[%s1790_s1 + $0xb0] sm:$0xf]  ;;  %v1255_v43 = vld [vmem:[%s1790_s1 + $0x64] sm:$0xf] }
   0xb   :  { %v1266_v42 = vld [vmem:[%s1790_s1 + $0xb4] sm:$0xf0]  ;;  %v1105_v44 = vld [vmem:[%s1790_s1 + $0x130] sm:$0xf]  ;;  %v1003_v46 = vld [vmem:[%s1790_s1 + $0x68] sm:$0xf0]  ;;  %v978_v48 = vor.u32 %v1250_v37, %v977_v36 }
   0xc   :  { %388 = vmatpush.bf16.msra.mxu0 %v994_v24  ;;  %v1282_v45 = vld [vmem:[%s1790_s1 + $0x134] sm:$0xf0]  ;;  %443 = vmatpush.bf16.msra.mxu3 %v1014_v38  ;;  %v1006_v47 = vor.u32 %v1255_v43, %v1003_v46  ;;  %v969_v49 = vld [vmem:[%s1790_s1 + $0x20] sm:$0xf]  ;;  %v1253_v50 = vld [vmem:[%s1790_s1 + $0x54] sm:$0xf]  ;;  %v1042_v52 = vor.u32 %v1266_v42, %v1041_v41 }
   0xd   :  { %407 = vmatpush.bf16.msra.mxu1 %v1058_v25  ;;  %v995_v51 = vld [vmem:[%s1790_s1 + $0x58] sm:$0xf0]  ;;  %v1106_v53 = vor.u32 %v1282_v45, %v1105_v44  ;;  %v1248_v54 = vld [vmem:[%s1790_s1 + $0x24] sm:$0xf0]  ;;  %v1033_v55 = vld [vmem:[%s1790_s1 + $0xa0] sm:$0xf] }
   0xe   :  { %426 = vmatpush.bf16.msra.mxu2 %v1122_v26  ;;  %v1264_v56 = vld [vmem:[%s1790_s1 + $0xa4] sm:$0xf0]  ;;  %v1097_v57 = vld [vmem:[%s1790_s1 + $0x120] sm:$0xf]  ;;  %v998_v59 = vor.u32 %v1253_v50, %v995_v51  ;;  %v1251_v60 = vld [vmem:[%s1790_s1 + $0x44] sm:$0xf]  ;;  %v970_v63 = vor.u32 %v1248_v54, %v969_v49 }
   0xf   :  { %v1280_v58 = vld [vmem:[%s1790_s1 + $0x124] sm:$0xf0]  ;;  %v987_v61 = vld [vmem:[%s1790_s1 + $0x48] sm:$0xf0]  ;;  %v1481_v62 = vld [vmem:[%s1791_s0] sm:$0xff]  ;;  %v1034_v0 = vor.u32 %v1264_v56, %v1033_v55 }
  0x10   :  { %389 = vmatpush.bf16.msra.mxu0 %v986_v35  ;;  %444 = vmatpush.bf16.msra.mxu3 %v1006_v47  ;;  %v961_v1 = vld [vmem:[%s1790_s1 + $0x10] sm:$0xf]  ;;  %v23_v2 = vld [vmem:[%s1791_s0 + $0x8] sm:$0xf]  ;;  %v1098_v3 = vor.u32 %v1280_v58, %v1097_v57  ;;  %v1246_v4 = vld [vmem:[%s1790_s1 + $0x14] sm:$0xf0]  ;;  %v990_v12 = vor.u32 %v1251_v60, %v987_v61 }
  0x11   :  { %408 = vmatpush.bf16.msra.mxu1 %v1050_v39  ;;  %v1025_v5 = vld [vmem:[%s1790_s1 + $0x90] sm:$0xf]  ;;  %v29_v6 = vunpack.c.l.b16 %v23_v2  ;;  %v34_v7 = vshrl.u32 %v1481_v62, 16  ;;  %v37_v8 = vshll.u32 %v1481_v62, 16  ;;  %v1262_v9 = vld [vmem:[%s1790_s1 + $0x94] sm:$0xf0]  ;;  %v962_v17 = vor.u32 %v1246_v4, %v961_v1  ;;  %vm1755_vm3 = vmand %vm517_vm2, %vm32_vm0 }
  0x12   :  { %427 = vmatpush.bf16.msra.mxu2 %v1114_v40  ;;  %v1089_v10 = vld [vmem:[%s1790_s1 + $0x110] sm:$0xf]  ;;  %v1278_v11 = vld [vmem:[%s1790_s1 + $0x114] sm:$0xf0]  ;;  %v1249_v15 = vld [vmem:[%s1790_s1 + $0x34] sm:$0xf]  ;;  %v1026_v21 = vor.u32 %v1262_v9, %v1025_v5 }
  0x13   :  { %v31_v13 = vpack.c.b16 %v29_v6, %v29_v6  ;;  %v36_v14 = vrot.slane %v34_v7, 7  ;;  %v979_v16 = vld [vmem:[%s1790_s1 + $0x38] sm:$0xf0]  ;;  %v953_v18 = vld [vmem:[%s1790_s1] sm:$0xf]  ;;  %v1090_v22 = vor.u32 %v1278_v11, %v1089_v10  ;;  %v70_v31 = vrot.slane %v1481_v62, 1 }
  0x14   :  { %390 = vmatpush.bf16.msra.mxu0 %v978_v48  ;;  %445 = vmatpush.bf16.msra.mxu3 %v998_v59  ;;  %v1244_v19 = vld [vmem:[%s1790_s1 + $0x4] sm:$0xf0]  ;;  %v1017_v20 = vld [vmem:[%s1790_s1 + $0x80] sm:$0xf]  ;;  %v1273_v28 = vld [vmem:[%s1790_s1 + $0xf4] sm:$0xf]  ;;  %v982_v30 = vor.u32 %v1249_v15, %v979_v16 }
  0x15   :  { %409 = vmatpush.bf16.msra.mxu1 %v1042_v52  ;;  %v1260_v23 = vld [vmem:[%s1790_s1 + $0x84] sm:$0xf0]  ;;  %v1081_v24 = vld [vmem:[%s1790_s1 + $0x100] sm:$0xf]  ;;  %v41_v25 = vshll.u32 %v31_v13, 16  ;;  %v39_v26 = vor.u32 %v37_v8, %v36_v14  ;;  %v954_v35 = vor.u32 %v1244_v19, %v953_v18  ;;  %v71_v37 = vrot.slane %v31_v13, 1 }
  0x16   :  { %428 = vmatpush.bf16.msra.mxu2 %v1106_v53  ;;  %v1276_v27 = vld [vmem:[%s1790_s1 + $0x104] sm:$0xf0]  ;;  %v1075_v29 = vld [vmem:[%s1790_s1 + $0xf8] sm:$0xf0]  ;;  %v1289_v33 = vld [vmem:[%s1790_s1 + $0x174] sm:$0xf]  ;;  %v1018_v36 = vor.u32 %v1260_v23, %v1017_v20 }
  0x17   :  { %v43_v32 = vsel %vm32_vm0, %v36_v14, %v41_v25  ;;  %v1139_v34 = vld [vmem:[%s1790_s1 + $0x178] sm:$0xf0]  ;;  %v44_v38 = vrot.slane %v1481_v62, 7  ;;  %v1247_v39 = vld [vmem:[%s1790_s1 + $0x24] sm:$0xf]  ;;  %v1082_v41 = vor.u32 %v1276_v27, %v1081_v24  ;;  %v73_v42 = vrot.slane %v39_v26, 1 }
  0x18   :  { %391 = vmatpush.bf16.msra.mxu0 %v970_v63  ;;  %446 = vmatpush.bf16.msra.mxu3 %v990_v12  ;;  %v971_v40 = vld [vmem:[%s1790_s1 + $0x28] sm:$0xf0]  ;;  %v74_v43 = vrot.slane %v43_v32, 1  ;;  %v1078_v45 = vor.u32 %v1273_v28, %v1075_v29  ;;  %v1142_v46 = vor.u32 %v1289_v33, %v1139_v34  ;;  %v1271_v47 = vld [vmem:[%s1790_s1 + $0xe4] sm:$0xf]  ;;  %v72_v53 = vsel %vm69_vm1, %v70_v31, %v71_v37 }
  0x19   :  { %410 = vmatpush.bf16.msra.mxu1 %v1034_v0  ;;  %v1554_v44 = vld [vmem:[%s1791_s0 + $0xc] sm:$0xff]  ;;  %v974_v49 = vor.u32 %v1247_v39, %v971_v40  ;;  %v1287_v50 = vld [vmem:[%s1790_s1 + $0x164] sm:$0xf]  ;;  %v946_v52 = vld [vmem:[%s1791_s0 + $0x14] sm:$0xf]  ;;  %v1572_v54 = vrot.slane %v44_v38, 1 }
  0x1a   :  { %429 = vmatpush.bf16.msra.mxu2 %v1098_v3  ;;  %v1067_v48 = vld [vmem:[%s1790_s1 + $0xe8] sm:$0xf0]  ;;  %v1245_v55 = vld [vmem:[%s1790_s1 + $0x14] sm:$0xf]  ;;  %v963_v56 = vld [vmem:[%s1790_s1 + $0x18] sm:$0xf0]  ;;  %v54_v57 = vunpack.c.l.b16 %v946_v52  ;;  %v1581_v58 = vsel %vm69_vm1, %v73_v42, %v74_v43 }
  0x1b   :  { %v1131_v51 = vld [vmem:[%s1790_s1 + $0x168] sm:$0xf0]  ;;  %v58_v59 = vshrl.u32 %v1554_v44, 16  ;;  %v1070_v60 = vor.u32 %v1271_v47, %v1067_v48  ;;  %v1269_v62 = vld [vmem:[%s1790_s1 + $0xd4] sm:$0xf]  ;;  %v966_v1 = vor.u32 %v1245_v55, %v963_v56  ;;  %v61_v7 = vshll.u32 %v1554_v44, 16 }
  0x1c   :  { %392 = vmatpush.bf16.msra.mxu0 %v962_v17  ;;  %447 = vmatpush.bf16.msra.mxu3 %v982_v30  ;;  %v1134_v61 = vor.u32 %v1287_v50, %v1131_v51  ;;  %v56_v63 = vpack.c.b16 %v54_v57, %v54_v57  ;;  %v1059_v0 = vld [vmem:[%s1790_s1 + $0xd8] sm:$0xf0]  ;;  %v1285_v2 = vld [vmem:[%s1790_s1 + $0x154] sm:$0xf]  ;;  %v1243_v4 = vld [vmem:[%s1790_s1 + $0x4] sm:$0xf] }
  0x1d   :  { %411 = vmatpush.bf16.msra.mxu1 %v1026_v21  ;;  %v1123_v3 = vld [vmem:[%s1790_s1 + $0x158] sm:$0xf0]  ;;  %v955_v5 = vld [vmem:[%s1790_s1 + $0x8] sm:$0xf0]  ;;  %v60_v6 = vrot.slane %v58_v59, 7  ;;  %v1062_v8 = vor.u32 %v1269_v62, %v1059_v0  ;;  %v81_v24 = vrot.slane %v1554_v44, 1 }
  0x1e   :  { %430 = vmatpush.bf16.msra.mxu2 %v1090_v22  ;;  %v1126_v9 = vor.u32 %v1285_v2, %v1123_v3  ;;  %v1267_v10 = vld [vmem:[%s1790_s1 + $0xc4] sm:$0xf]  ;;  %v65_v11 = vshll.u32 %v56_v63, 16  ;;  %v1051_v12 = vld [vmem:[%s1790_s1 + $0xc8] sm:$0xf0]  ;;  %v958_v13 = vor.u32 %v1243_v4, %v955_v5  ;;  %v82_v25 = vrot.slane %v56_v63, 1 }
  0x1f   :  { %v1283_v14 = vld [vmem:[%s1790_s1 + $0x144] sm:$0xf]  ;;  %v1115_v15 = vld [vmem:[%s1790_s1 + $0x148] sm:$0xf0]  ;;  %v63_v16 = vor.u32 %v61_v7, %v60_v6  ;;  %v1054_v17 = vor.u32 %v1267_v10, %v1051_v12  ;;  %v1265_v20 = vld [vmem:[%s1790_s1 + $0xb4] sm:$0xf] }
  0x20   :  { %393 = vmatpush.bf16.msra.mxu0 %v954_v35  ;;  %448 = vmatpush.bf16.msra.mxu3 %v974_v49  ;;  %v1118_v18 = vor.u32 %v1283_v14, %v1115_v15  ;;  %v67_v19 = vsel %vm32_vm0, %v60_v6, %v65_v11  ;;  %v1043_v21 = vld [vmem:[%s1790_s1 + $0xb8] sm:$0xf0]  ;;  %v1281_v22 = vld [vmem:[%s1790_s1 + $0x134] sm:$0xf]  ;;  %v68_v26 = vrot.slane %v1554_v44, 7  ;;  %v83_v35 = vsel %vm69_vm1, %v81_v24, %v82_v25  ;;  %v1312_v59 = vld [vmem:[%s1792_s3 + $0xa8] sm:$0xff] }
  0x21   :  { %412 = vmatpush.bf16.msra.mxu1 %v1018_v36  ;;  %v1107_v23 = vld [vmem:[%s1790_s1 + $0x138] sm:$0xf0]  ;;  %v84_v27 = vrot.slane %v63_v16, 1  ;;  %v85_v28 = vrot.slane %v67_v19, 1  ;;  %v1046_v29 = vor.u32 %v1265_v20, %v1043_v21  ;;  %v1263_v31 = vld [vmem:[%s1790_s1 + $0xa4] sm:$0xf] }
  0x22   :  { %431 = vmatpush.bf16.msra.mxu2 %v1082_v41  ;;  %v1110_v30 = vor.u32 %v1281_v22, %v1107_v23  ;;  %v1035_v32 = vld [vmem:[%s1790_s1 + $0xa8] sm:$0xf0]  ;;  %v1279_v33 = vld [vmem:[%s1790_s1 + $0x124] sm:$0xf]  ;;  %v87_v36 = vrot.slane %v68_v26, 1  ;;  %v1306_v52 = vld [vmem:[%s1792_s3 + $0x78] sm:$0xff] }
  0x23   :  { %394 = vmatmul.bf16.vlgmr.msra.gmra.mxu0 %v72_v53  ;;  %v1099_v34 = vld [vmem:[%s1790_s1 + $0x128] sm:$0xf0]  ;;  %v86_v37 = vsel %vm69_vm1, %v84_v27, %v85_v28  ;;  %v1038_v38 = vor.u32 %v1263_v31, %v1035_v32  ;;  %v1261_v40 = vld [vmem:[%s1790_s1 + $0x94] sm:$0xf]  ;;  %v1027_v41 = vld [vmem:[%s1790_s1 + $0x98] sm:$0xf0] }
  0x24   :  { %462 = vmatpush.bf16.msrb.mxu0 %v1078_v45  ;;  %413 = vmatmul.bf16.vlgmr.msra.gmra.mxu1 %v1581_v58  ;;  %v1102_v39 = vor.u32 %v1279_v33, %v1099_v34  ;;  %v1277_v42 = vld [vmem:[%s1790_s1 + $0x114] sm:$0xf]  ;;  %v1091_v43 = vld [vmem:[%s1790_s1 + $0x118] sm:$0xf0]  ;;  %v1030_v44 = vor.u32 %v1261_v40, %v1027_v41  ;;  %v1019_v47 = vld [vmem:[%s1790_s1 + $0x88] sm:$0xf0] }
  0x25   :  { %481 = vmatpush.bf16.msrb.mxu1 %v1142_v46  ;;  %432 = vmatmul.bf16.vlgmr.msra.gmra.mxu2 %v1572_v54  ;;  %v1094_v45 = vor.u32 %v1277_v42, %v1091_v43  ;;  %v1259_v46 = vld [vmem:[%s1790_s1 + $0x84] sm:$0xf]  ;;  %v1083_v49 = vld [vmem:[%s1790_s1 + $0x108] sm:$0xf0]  ;;  %v1298_v55 = vld [vmem:[%s1792_s3 + $0x38] sm:$0xff] }
  0x26   :  { %449 = vmatpush.bf16.msra.mxu3 %v966_v1  ;;  %v1275_v48 = vld [vmem:[%s1790_s1 + $0x104] sm:$0xf]  ;;  %v1022_v50 = vor.u32 %v1259_v46, %v1019_v47  ;;  %740 = vmatpush.bf16.msrb.mxu2 %v1298_v55  ;;  %v1313_v56 = vld [vmem:[%s1792_s3 + $0xb0] sm:$0xff]  ;;  %v1302_v2 = vld [vmem:[%s1792_s3 + $0x58] sm:$0xff]  ;;  %vm822_vm5 = vsmask.f32 7424 }
  0x27   :  { %v1086_v51 = vor.u32 %v1275_v48, %v1083_v49  ;;  %v1297_v57 = vld [vmem:[%s1792_s3 + $0x30] sm:$0xff]  ;;  %v1311_v62 = vld [vmem:[%s1792_s3 + $0xa0] sm:$0xff]  ;;  %v1310_v3 = vld [vmem:[%s1792_s3 + $0x98] sm:$0xff] }
  0x28   :  { %463 = vmatpush.bf16.msrb.mxu0 %v1070_v60  ;;  %v1296_v60 = vld [vmem:[%s1792_s3 + $0x28] sm:$0xff]  ;;  %v1295_v63 = vld [vmem:[%s1792_s3 + $0x20] sm:$0xff]  ;;  %v1294_v4 = vld [vmem:[%s1792_s3 + $0x18] sm:$0xff] }
  0x29   :  { %482 = vmatpush.bf16.msrb.mxu1 %v1134_v61  ;;  %v1303_v61 = vld [vmem:[%s1792_s3 + $0x60] sm:$0xff]  ;;  %v1301_v5 = vld [vmem:[%s1792_s3 + $0x50] sm:$0xff]  ;;  %v1300_v10 = vld [vmem:[%s1792_s3 + $0x48] sm:$0xff] }
  0x2a   :  { %450 = vmatpush.bf16.msra.mxu3 %v958_v13  ;;  %741 = vmatpush.bf16.msrb.mxu2 %v1297_v57  ;;  %v1309_v6 = vld [vmem:[%s1792_s3 + $0x90] sm:$0xff]  ;;  %v1308_v11 = vld [vmem:[%s1792_s3 + $0x88] sm:$0xff]  ;;  %v1299_v13 = vld [vmem:[%s1792_s3 + $0x40] sm:$0xff] }
  0x2b   :  { %v1293_v7 = vld [vmem:[%s1792_s3 + $0x10] sm:$0xff]  ;;  %v1292_v12 = vld [vmem:[%s1792_s3 + $0x8] sm:$0xff]  ;;  %v1307_v14 = vld [vmem:[%s1792_s3 + $0x80] sm:$0xff] }
  0x2c   :  { %464 = vmatpush.bf16.msrb.mxu0 %v1062_v8  ;;  %v1291_v15 = vld [vmem:[%s1792_s3] sm:$0xff]  ;;  %vm823_vm6 = vmand %vm821_vm4, %vm822_vm5 }
  0x2d   :  { %483 = vmatpush.bf16.msrb.mxu1 %v1126_v9  ;;  %451 = vmatmul.bf16.vlgmr.msra.gmra.mxu3 %v72_v53  ;;  %v1314_v53 = vld [vmem:[%s1792_s3 + $0xb8] sm:$0xff]  ;;  %v140_v21 = vld [vmem:[%s1793_s2] sm:$0x3] }
  0x2e   :  { %759 = vmatpush.bf16.msrb.mxu3 %v1306_v52  ;;  %742 = vmatpush.bf16.msrb.mxu2 %v1296_v60  ;;  %v143_v23 = vperm.slane %v140_v21, 1  ;;  %v142_v24 = vperm.slane %v140_v21, 0 }
  0x30   :  { %465 = vmatpush.bf16.msrb.mxu0 %v1054_v17 }
  0x31   :  { %484 = vmatpush.bf16.msrb.mxu1 %v1118_v18 }
  0x32   :  { %743 = vmatpush.bf16.msrb.mxu2 %v1295_v63 }
  0x33   :  { %399 = vmatmul.bf16.gmra.mxu0 %v83_v35 }
  0x34   :  { %466 = vmatpush.bf16.msrb.mxu0 %v1046_v29  ;;  %418 = vmatmul.bf16.gmra.mxu1 %v86_v37 }
  0x35   :  { %485 = vmatpush.bf16.msrb.mxu1 %v1110_v30  ;;  %437 = vmatmul.bf16.gmra.mxu2 %v87_v36 }
  0x36   :  { %744 = vmatpush.bf16.msrb.mxu2 %v1294_v4 }
  0x38   :  { %467 = vmatpush.bf16.msrb.mxu0 %v1038_v38 }
  0x39   :  { %486 = vmatpush.bf16.msrb.mxu1 %v1102_v39 }
  0x3a   :  { %745 = vmatpush.bf16.msrb.mxu2 %v1293_v7 }
  0x3c   :  { %468 = vmatpush.bf16.msrb.mxu0 %v1030_v44 }
  0x3d   :  { %487 = vmatpush.bf16.msrb.mxu1 %v1094_v45  ;;  %456 = vmatmul.bf16.gmra.mxu3 %v83_v35 }
  0x3e   :  { %746 = vmatpush.bf16.msrb.mxu2 %v1292_v12 }
  0x40   :  { %469 = vmatpush.bf16.msrb.mxu0 %v1022_v50 }
  0x41   :  { %488 = vmatpush.bf16.msrb.mxu1 %v1086_v51 }
  0x42   :  { %747 = vmatpush.bf16.msrb.mxu2 %v1291_v15 }
  0x43   :  { %470 = vmatmul.bf16.vlgmr.msrb.gmra.mxu0 %v1581_v58  ;;  %v1304_v58 = vld [vmem:[%s1792_s3 + $0x68] sm:$0xff] }
  0x44   :  { %489 = vmatmul.bf16.vlgmr.msrb.gmra.mxu1 %v1572_v54  ;;  %778 = vmatpush.bf16.msra.mxu0 %v1314_v53  ;;  %v1305_v54 = vld [vmem:[%s1792_s3 + $0x70] sm:$0xff] }
  0x45   :  { %834 = vmatpush.bf16.msra.mxu1 %v1298_v55  ;;  %760 = vmatpush.bf16.msrb.mxu3 %v1305_v54 }
  0x46   :  { %853 = vmatpush.bf16.msra.mxu2 %v1306_v52 }
  0x48   :  { %779 = vmatpush.bf16.msra.mxu0 %v1313_v56 }
  0x49   :  { %835 = vmatpush.bf16.msra.mxu1 %v1297_v57  ;;  %761 = vmatpush.bf16.msrb.mxu3 %v1304_v58 }
  0x4a   :  { %854 = vmatpush.bf16.msra.mxu2 %v1305_v54 }
  0x4c   :  { %780 = vmatpush.bf16.msra.mxu0 %v1312_v59 }
  0x4d   :  { %836 = vmatpush.bf16.msra.mxu1 %v1296_v60  ;;  %762 = vmatpush.bf16.msrb.mxu3 %v1303_v61 }
  0x4e   :  { %855 = vmatpush.bf16.msra.mxu2 %v1304_v58 }
  0x50   :  { %781 = vmatpush.bf16.msra.mxu0 %v1311_v62 }
  0x51   :  { %837 = vmatpush.bf16.msra.mxu1 %v1295_v63  ;;  %763 = vmatpush.bf16.msrb.mxu3 %v1302_v2 }
  0x52   :  { %856 = vmatpush.bf16.msra.mxu2 %v1303_v61 }
  0x53   :  { %475 = vmatmul.bf16.gmra.mxu0 %v86_v37 }
  0x54   :  { %494 = vmatmul.bf16.gmra.mxu1 %v87_v36  ;;  %782 = vmatpush.bf16.msra.mxu0 %v1310_v3 }
  0x55   :  { %838 = vmatpush.bf16.msra.mxu1 %v1294_v4  ;;  %764 = vmatpush.bf16.msrb.mxu3 %v1301_v5 }
  0x56   :  { %857 = vmatpush.bf16.msra.mxu2 %v1302_v2 }
  0x58   :  { %783 = vmatpush.bf16.msra.mxu0 %v1309_v6 }
  0x59   :  { %839 = vmatpush.bf16.msra.mxu1 %v1293_v7  ;;  %765 = vmatpush.bf16.msrb.mxu3 %v1300_v10 }
  0x5a   :  { %858 = vmatpush.bf16.msra.mxu2 %v1301_v5 }
  0x5c   :  { %784 = vmatpush.bf16.msra.mxu0 %v1308_v11 }
  0x5d   :  { %840 = vmatpush.bf16.msra.mxu1 %v1292_v12  ;;  %766 = vmatpush.bf16.msrb.mxu3 %v1299_v13 }
  0x5e   :  { %859 = vmatpush.bf16.msra.mxu2 %v1300_v10 }
  0x60   :  { %785 = vmatpush.bf16.msra.mxu0 %v1307_v14 }
  0x61   :  { %841 = vmatpush.bf16.msra.mxu1 %v1291_v15  ;;  %872 = vmatpush.bf16.msra.mxu3 %v1314_v53 }
  0x62   :  { %860 = vmatpush.bf16.msra.mxu2 %v1299_v13 }
  0x65   :  { %873 = vmatpush.bf16.msra.mxu3 %v1313_v56 }
  0x69   :  { %874 = vmatpush.bf16.msra.mxu3 %v1312_v59 }
  0x6d   :  { %875 = vmatpush.bf16.msra.mxu3 %v1311_v62 }
  0x71   :  { %876 = vmatpush.bf16.msra.mxu3 %v1310_v3 }
  0x75   :  { %877 = vmatpush.bf16.msra.mxu3 %v1309_v6 }
  0x79   :  { %878 = vmatpush.bf16.msra.mxu3 %v1308_v11 }
  0x7d   :  { %879 = vmatpush.bf16.msra.mxu3 %v1307_v14 }
  0xa0   :  { %v395_v0 = vpop.f32.mrf.mxu0 }
  0xa1   :  { %v1708_v1 = vpop.f32.mrf.mxu1  ;;  %v396_v29 = vadd.f32 %v395_v0, %v142_v24 }
  0xa3   :  { %v415_v33 = vadd.f32 %v1708_v1, %v396_v29 }
  0xa8   :  { %v397_v8 = vpop.f32.mrf.mxu0  ;;  %v433_v22 = vpop.f32.mrf.mxu2 }
  0xa9   :  { %v416_v9 = vpop.f32.mrf.mxu1  ;;  %v398_v32 = vadd.f32 %v397_v8, %v142_v24  ;;  %v434_v37 = vadd.f32 %v433_v22, %v415_v33 }
  0xab   :  { %v417_v38 = vadd.f32 %v416_v9, %v398_v32 }
  0xb0   :  { %v400_v16 = vpop.f32.mrf.mxu0  ;;  %v452_v18 = vpop.f32.mrf.mxu3 }
  0xb1   :  { %v1746_v17 = vpop.f32.mrf.mxu1  ;;  %v453_v25 = vadd.f32 %v452_v18, %v143_v23  ;;  %v435_v31 = vpop.f32.mrf.mxu2  ;;  %v401_v56 = vadd.f32 %v400_v16, %v142_v24 }
  0xb2   :  { %v436_v42 = vadd.f32 %v435_v31, %v417_v38 }
  0xb3   :  { %v420_v0 = vadd.f32 %v1746_v17, %v401_v56 }
  0xb8   :  { %v402_v19 = vpop.f32.mrf.mxu0  ;;  %v454_v26 = vpop.f32.mrf.mxu3 }
  0xb9   :  { %v1748_v20 = vpop.f32.mrf.mxu1  ;;  %v455_v34 = vadd.f32 %v454_v26, %v143_v23  ;;  %v438_v46 = vpop.f32.mrf.mxu2  ;;  %v403_v60 = vadd.f32 %v402_v19, %v142_v24 }
  0xba   :  { %v439_v6 = vadd.f32 %v438_v46, %v420_v0 }
  0xbb   :  { %v422_v7 = vadd.f32 %v1748_v20, %v403_v60 }
  0xc0   :  { %v471_v27 = vpop.f32.mrf.mxu0  ;;  %v457_v41 = vpop.f32.mrf.mxu3 }
  0xc1   :  { %v490_v28 = vpop.f32.mrf.mxu1  ;;  %v472_v30 = vadd.f32 %v471_v27, %v453_v25  ;;  %v458_v47 = vadd.f32 %v457_v41, %v143_v23  ;;  %v440_v4 = vpop.f32.mrf.mxu2 }
  0xc2   :  { %v441_v11 = vadd.f32 %v440_v4, %v422_v7 }
  0xc3   :  { %v491_v35 = vadd.f32 %v490_v28, %v472_v30 }
  0xc5   :  { %v500_v43 = vpack.c.bf16 %v491_v35, %v434_v37 }
  0xc7   :  { %v506_v48 = vunpack.c.h.b16 %v500_v43  ;;  %v520_v49 = vunpack.c.l.b16 %v500_v43 }
  0xc8   :  { %v473_v36 = vpop.f32.mrf.mxu0  ;;  %v459_v59 = vpop.f32.mrf.mxu3 }
  0xc9   :  { %v474_v39 = vadd.f32 %v473_v36, %v455_v34  ;;  %v492_v40 = vpop.f32.mrf.mxu1  ;;  %v460_v1 = vadd.f32 %v459_v59, %v143_v23 }
  0xcb   :  { %v493_v44 = vadd.f32 %v492_v40, %v474_v39 }
  0xcd   :  { %v501_v45 = vpack.c.bf16 %v493_v44, %v436_v42  ;;  %v1768_v42 = vld [vmem:[%s1794_s4] ss:$0 sm:$0xff] }
  0xcf   :  { %v507_v50 = vunpack.c.h.b16 %v501_v45  ;;  %v521_v51 = vunpack.c.l.b16 %v501_v45 }
  0xd0   :  { %v476_v52 = vpop.f32.mrf.mxu0 }
  0xd1   :  { %v508_v53 = vpack.c.b16 %v507_v50, %v506_v48  ;;  %v522_v55 = vpack.c.b16 %v521_v51, %v520_v49  ;;  %v495_v54 = vpop.f32.mrf.mxu1  ;;  %v477_v57 = vadd.f32 %v476_v52, %v458_v47 }
  0xd3   :  { %767 = vmatmul.bf16.vlgmr.msrb.gmra.mxu3 %v522_v55  ;;  %786 = vmatmul.bf16.vlgmr.msra.gmra.mxu0 %v508_v53  ;;  %v510_v58 = vshrl.u32 %v508_v53, 16  ;;  %v513_v62 = vshll.u32 %v508_v53, 16  ;;  %v496_v2 = vadd.f32 %v495_v54, %v477_v57  ;;  %v816_v24 = vshll.u32 %v522_v55, 16 }
  0xd4   :  { %842 = vmatmul.bf16.vlgmr.msra.gmra.mxu1 %v522_v55  ;;  %v814_v28 = vshrl.u32 %v522_v55, 16 }
  0xd5   :  { %v512_v61 = vrot.slane %v510_v58, 7  ;;  %v502_v12 = vpack.c.bf16 %v496_v2, %v439_v6  ;;  %v818_v27 = vrot.slane %v816_v24, 1 }
  0xd7   :  { %v515_v3 = vor.u32 %v513_v62, %v512_v61  ;;  %v527_v15 = vunpack.c.h.b16 %v502_v12  ;;  %v539_v16 = vunpack.c.l.b16 %v502_v12  ;;  %v819_v29 = vor.u32 %v818_v27, %v814_v28 }
  0xd8   :  { %v478_v5 = vpop.f32.mrf.mxu0 }
  0xd9   :  { %v479_v8 = vadd.f32 %v478_v5, %v460_v1  ;;  %v519_v9 = vsel %vm1755_vm3, 0, %v515_v3  ;;  %v497_v10 = vpop.f32.mrf.mxu1  ;;  %v824_v30 = vsel %vm823_vm6, %v819_v29, 0 }
  0xda   :  { %748 = vmatmul.bf16.vlgmr.msrb.gmra.mxu2 %v519_v9 }
  0xdb   :  { %v498_v13 = vadd.f32 %v497_v10, %v479_v8 }
  0xdd   :  { %v503_v14 = vpack.c.bf16 %v498_v13, %v441_v11 }
  0xdf   :  { %v528_v17 = vunpack.c.h.b16 %v503_v14  ;;  %v540_v18 = vunpack.c.l.b16 %v503_v14 }
  0xe1   :  { %v529_v19 = vpack.c.b16 %v528_v17, %v527_v15  ;;  %v541_v21 = vpack.c.b16 %v540_v18, %v539_v16 }
  0xe3   :  { %772 = vmatmul.bf16.gmra.mxu3 %v541_v21  ;;  %791 = vmatmul.bf16.gmra.mxu0 %v529_v19  ;;  %v531_v22 = vshrl.u32 %v529_v19, 16  ;;  %v534_v23 = vshll.u32 %v529_v19, 16  ;;  %v828_v31 = vshll.u32 %v541_v21, 16  ;;  %v826_v33 = vshrl.u32 %v541_v21, 16 }
  0xe4   :  { %847 = vmatmul.bf16.gmra.mxu1 %v541_v21 }
  0xe5   :  { %v533_v20 = vrot.slane %v531_v22, 7  ;;  %v830_v32 = vrot.slane %v828_v31, 1 }
  0xe7   :  { %v536_v25 = vor.u32 %v534_v23, %v533_v20  ;;  %v831_v34 = vor.u32 %v830_v32, %v826_v33 }
  0xe9   :  { %v538_v26 = vsel %vm1755_vm3, 0, %v536_v25  ;;  %v833_v35 = vsel %vm823_vm6, %v831_v34, 0 }
  0xea   :  { %753 = vmatmul.bf16.gmra.mxu2 %v538_v26 }
  0xf3   :  { %880 = vmatmul.bf16.vlgmr.msra.gmra.mxu3 %v824_v30 }
  0xfa   :  { %861 = vmatmul.bf16.vlgmr.msra.gmra.mxu2 %v508_v53 }
 0x103   :  { %885 = vmatmul.bf16.gmra.mxu3 %v833_v35 }
 0x10a   :  { %866 = vmatmul.bf16.gmra.mxu2 %v529_v19 }
 0x150   :  { %v787_v45 = vpop.f32.mrf.mxu0 }
 0x151   :  { %v843_v46 = vpop.f32.mrf.mxu1 }
 0x152   :  { %v844_v53 = vadd.f32 %v1768_v42, %v843_v46 }
 0x156   :  { %v768_v36 = vpop.f32.mrf.mxu3 }
 0x158   :  { %v789_v52 = vpop.f32.mrf.mxu0 }
 0x159   :  { %v845_v56 = vpop.f32.mrf.mxu1 }
 0x15a   :  { %v846_v2 = vadd.f32 %v1768_v42, %v845_v56 }
 0x15d   :  { %v749_v37 = vpop.f32.mrf.mxu2 }
 0x15e   :  { %v770_v38 = vpop.f32.mrf.mxu3  ;;  %v750_v44 = vadd.f32 %v1768_v42, %v749_v37 }
 0x160   :  { %v769_v47 = vadd.f32 %v768_v36, %v750_v44  ;;  %v792_v6 = vpop.f32.mrf.mxu0 }
 0x161   :  { %v848_v11 = vpop.f32.mrf.mxu1 }
 0x162   :  { %v788_v49 = vadd.f32 %v787_v45, %v769_v47  ;;  %v849_v21 = vadd.f32 %v1768_v42, %v848_v11 }
 0x164   :  { %v801_v55 = vmul.f32 0.01, %v788_v49  ;;  %vm797_vm7 = vcmp.gt.f32.partialorder %v788_v49, 0.0 }
 0x165   :  { %v751_v39 = vpop.f32.mrf.mxu2 }
 0x166   :  { %v773_v40 = vpop.f32.mrf.mxu3  ;;  %v752_v50 = vadd.f32 %v1768_v42, %v751_v39  ;;  %v805_v59 = vsel %vm797_vm7, %v788_v49, %v801_v55 }
 0x167   :  { %v809_v0 = vpack.c.bf16 %v805_v59, %v805_v59 }
 0x168   :  { %v771_v54 = vadd.f32 %v770_v38, %v752_v50  ;;  %v794_v29 = vpop.f32.mrf.mxu0 }
 0x169   :  { %v911_v10 = vunpack.c.l.b16 %v809_v0  ;;  %v850_v34 = vpop.f32.mrf.mxu1 }
 0x16a   :  { %v790_v60 = vadd.f32 %v789_v52, %v771_v54  ;;  %v851_v38 = vadd.f32 %v1768_v42, %v850_v34 }
 0x16c   :  { %v802_v3 = vmul.f32 0.01, %v790_v60  ;;  %vm798_vm9 = vcmp.gt.f32.partialorder %v790_v60, 0.0 }
 0x16d   :  { %v754_v41 = vpop.f32.mrf.mxu2 }
 0x16e   :  { %v775_v43 = vpop.f32.mrf.mxu3  ;;  %v755_v61 = vadd.f32 %v1768_v42, %v754_v41  ;;  %v806_v13 = vsel %vm798_vm9, %v790_v60, %v802_v3 }
 0x16f   :  { %v810_v19 = vpack.c.bf16 %v806_v13, %v806_v13 }
 0x170   :  { %v774_v4 = vadd.f32 %v773_v40, %v755_v61 }
 0x171   :  { %v912_v28 = vunpack.c.l.b16 %v810_v19 }
 0x172   :  { %v793_v14 = vadd.f32 %v792_v6, %v774_v4 }
 0x174   :  { %v803_v22 = vmul.f32 0.01, %v793_v14  ;;  %vm799_vm11 = vcmp.gt.f32.partialorder %v793_v14, 0.0 }
 0x175   :  { %v756_v48 = vpop.f32.mrf.mxu2 }
 0x176   :  { %v881_v51 = vpop.f32.mrf.mxu3  ;;  %v757_v15 = vadd.f32 %v1768_v42, %v756_v48  ;;  %v807_v31 = vsel %vm799_vm11, %v793_v14, %v803_v22 }
 0x177   :  { %v811_v37 = vpack.c.bf16 %v807_v31, %v807_v31 }
 0x178   :  { %v776_v20 = vadd.f32 %v775_v43, %v757_v15 }
 0x179   :  { %v913_v45 = vunpack.c.l.b16 %v811_v37 }
 0x17a   :  { %v795_v32 = vadd.f32 %v794_v29, %v776_v20 }
 0x17c   :  { %v804_v39 = vmul.f32 0.01, %v795_v32  ;;  %vm800_vm13 = vcmp.gt.f32.partialorder %v795_v32, 0.0 }
 0x17d   :  { %v862_v57 = vpop.f32.mrf.mxu2 }
 0x17e   :  { %v863_v58 = vadd.f32 %v862_v57, %v844_v53  ;;  %v883_v1 = vpop.f32.mrf.mxu3  ;;  %v808_v48 = vsel %vm800_vm13, %v795_v32, %v804_v39 }
 0x17f   :  { %v812_v52 = vpack.c.bf16 %v808_v48, %v808_v48 }
 0x180   :  { %v882_v62 = vadd.f32 %v881_v51, %v863_v58 }
 0x181   :  { %v914_v55 = vunpack.c.l.b16 %v812_v52 }
 0x182   :  { %vm891_vm8 = vcmp.gt.f32.partialorder %v882_v62, 0.0  ;;  %v895_v63 = vmul.f32 0.01, %v882_v62 }
 0x184   :  { %v899_v5 = vsel %vm891_vm8, %v882_v62, %v895_v63 }
 0x185   :  { %v903_v7 = vpack.c.bf16 %v899_v5, %v899_v5  ;;  %v864_v8 = vpop.f32.mrf.mxu2 }
 0x186   :  { %v865_v9 = vadd.f32 %v864_v8, %v846_v2  ;;  %v886_v25 = vpop.f32.mrf.mxu3 }
 0x187   :  { %v919_v12 = vunpack.c.l.b16 %v903_v7 }
 0x188   :  { %v884_v16 = vadd.f32 %v883_v1, %v865_v9 }
 0x189   :  { %v923_v17 = vpack.c.b16 %v919_v12, %v911_v10 }
 0x18a   :  { %vm892_vm10 = vcmp.gt.f32.partialorder %v884_v16, 0.0  ;;  %v896_v18 = vmul.f32 0.01, %v884_v16 }
 0x18b   :  { %927 = vst [vmem:[%s1795_s5] sm:$0xff] %v923_v17 }
 0x18c   :  { %v900_v23 = vsel %vm892_vm10, %v884_v16, %v896_v18 }
 0x18d   :  { %v904_v24 = vpack.c.bf16 %v900_v23, %v900_v23  ;;  %v867_v26 = vpop.f32.mrf.mxu2 }
 0x18e   :  { %v868_v27 = vadd.f32 %v867_v26, %v849_v21  ;;  %v888_v47 = vpop.f32.mrf.mxu3 }
 0x18f   :  { %v920_v30 = vunpack.c.l.b16 %v904_v24 }
 0x190   :  { %v887_v33 = vadd.f32 %v886_v25, %v868_v27 }
 0x191   :  { %v924_v35 = vpack.c.b16 %v920_v30, %v912_v28 }
 0x192   :  { %vm893_vm12 = vcmp.gt.f32.partialorder %v887_v33, 0.0  ;;  %v897_v36 = vmul.f32 0.01, %v887_v33 }
 0x193   :  { %928 = vst [vmem:[%s1795_s5 + $0x8] sm:$0xff] %v924_v35 }
 0x194   :  { %v901_v40 = vsel %vm893_vm12, %v887_v33, %v897_v36 }
 0x195   :  { %v905_v41 = vpack.c.bf16 %v901_v40, %v901_v40  ;;  %v869_v43 = vpop.f32.mrf.mxu2 }
 0x196   :  { %v870_v44 = vadd.f32 %v869_v43, %v851_v38 }
 0x197   :  { %v921_v46 = vunpack.c.l.b16 %v905_v41 }
 0x198   :  { %v889_v49 = vadd.f32 %v888_v47, %v870_v44 }
 0x199   :  { %v929_v50 = vpack.c.b16 %v921_v46, %v913_v45 }
 0x19a   :  { %vm894_vm14 = vcmp.gt.f32.partialorder %v889_v49, 0.0  ;;  %v898_v51 = vmul.f32 0.01, %v889_v49 }
 0x19b   :  { %1239 = vst [vmem:[%s1795_s5 + $0x10] sm:$0xff] %v929_v50 }
 0x19c   :  { %v902_v42 = vsel %vm894_vm14, %v889_v49, %v898_v51 }
 0x19d   :  { %v906_v53 = vpack.c.bf16 %v902_v42, %v902_v42 }
 0x19f   :  { %v922_v54 = vunpack.c.l.b16 %v906_v53 }
 0x1a1   :  { %v930_v56 = vpack.c.b16 %v922_v54, %v914_v55 }
 0x1a3   :  { %1240 = vst [vmem:[%s1795_s5 + $0x18] sm:$0xff] %v930_v56 }

</bundles_post_ra>
